<compile_context>
chip_gen: v7x
topology: tpu7x:2x2x1
jax: 0.10.0
libtpu: 0.0.40
codegen_flags: <defaults>
</compile_context>

<pallas_src>
import math
import functools

import jax
import jax.numpy as jnp
from jax.experimental import pallas as pl
from jax.experimental.pallas import tpu as pltpu

LANE = 128
SUBLANE = 8
_MAX_T_CHUNK = 16          # cap on the unrolled in-kernel timestep loop
_TARGET_TILE_ROWS = 2048   # 2048 rows x 128 lanes x 4 B = 1 MiB per timestep/buffer


def _cdiv(a, b):
    return -(-a // b)


def _round_up(x, m):
    return _cdiv(x, m) * m


@functools.lru_cache(maxsize=None)
def _vmem_sizes():
    """Return (pipeline VMEM budget, physical VMEM capacity) in bytes."""
    try:
        cap = int(pltpu.get_tpu_info().vmem_capacity_bytes)
    except Exception:
        cap = 64 << 20                      # conservative (v7x-sized) fallback
    cap = max(cap, 32 << 20)
    # ~half of physical VMEM for the pipeline buffers: 32 MiB on 64 MiB parts
    # (v7x), 64 MiB on 128 MiB parts (v5e / v6e).
    budget = max(16 << 20, min(cap // 2, 64 << 20))
    return budget, cap


def _choose_tiling(T, rows, in_itemsize, out_itemsize, budget):
    """Pick (t_chunk, tile_rows, n_row_tiles, n_t_chunks) under `budget`."""
    # Whole time axis inside one block when it is short (the common SNN case);
    # otherwise balanced chunks of at most _MAX_T_CHUNK timesteps.  t_chunk is
    # the *leading* block dim, so it has no (8,128) alignment constraint and
    # does not need to divide T (the tail chunk is a masked partial block).
    t_chunk = _cdiv(T, _cdiv(T, _MAX_T_CHUNK))

    # VMEM per 128-lane row: 2x input + 2x output double buffers + f32 v scratch.
    per_row = LANE * (t_chunk * 2 * (in_itemsize + out_itemsize) + 4)
    max_rows = max(SUBLANE, (budget // per_row) // SUBLANE * SUBLANE)
    target = min(_TARGET_TILE_ROWS, max_rows)

    if rows <= target:
        # Single row tile: block dim equals the full array dim (legal even when
        # not a multiple of 8) — no padding, no partial block.
        tile_rows = rows
    else:
        # Balanced 8-aligned tiles; the last tile may be partial (masked).
        tile_rows = _round_up(_cdiv(rows, _cdiv(rows, target)), SUBLANE)

    n_row_tiles = _cdiv(rows, tile_rows)
    n_t_chunks = _cdiv(T, t_chunk)
    return t_chunk, tile_rows, n_row_tiles, n_t_chunks


def _make_lif_kernel(v_init, v_decay, v_threshold, v_reset, t_chunk):
    """Build a LIF kernel with static neuron hyperparameters baked in."""
    v_init = float(v_init)
    v_decay = float(v_decay)
    v_threshold = float(v_threshold)
    v_reset = float(v_reset)
    soft_reset = 0.0 <= v_reset < 10000.0
    hard_reset = 10000.0 <= v_reset < 20000.0
    hard_value = v_reset - 10000.0

    def kernel(x_ref, o_ref, v_ref):
        # Grid axis 1 (time chunks) MUST stay the innermost, sequentially
        # executed ("arbitrary") axis: the v recurrence is carried in v_ref
        # across time chunks of one row tile and reset at tc == 0.
        tc = pl.program_id(1)

        @pl.when(tc == 0)
        def _():
            v_ref[...] = jnp.full(v_ref.shape, v_init, dtype=v_ref.dtype)

        v = v_ref[...]
        # Static (unrolled) loop over the timesteps held in this block.  For a
        # partial tail time-chunk the out-of-range iterations read garbage and
        # their stores are masked on writeback — harmless (no transcendentals,
        # and v is re-initialized at the next row tile).
        for t in range(t_chunk):
            v = v * jnp.float32(v_decay) + x_ref[t].astype(jnp.float32)
            fire = v >= jnp.float32(v_threshold)           # == (v - thr >= 0)
            if soft_reset:
                v = jnp.where(fire, v - jnp.float32(v_threshold), v)
            elif hard_reset:
                v = jnp.where(fire, jnp.float32(hard_value), v)
            o_ref[t] = fire.astype(o_ref.dtype)
        v_ref[...] = v

    return kernel


@functools.partial(
    jax.jit,
    static_argnames=("v_init", "v_decay", "v_threshold", "v_reset", "out_dtype"),
)
def lif_layer_forward(
    input_current,
    *,
    v_init=0.0,
    v_decay=0.5,
    v_threshold=1.0,
    v_reset=0.0,
    out_dtype=jnp.float32,   # PyTorch contract is float32; bf16/int8 opt-in
):
    """Pallas implementation of LIF_layer.forward (sstep=False path)."""
    orig_shape = input_current.shape
    T = orig_shape[0]
    P = int(math.prod(orig_shape[1:]))

    in_itemsize = jnp.dtype(input_current.dtype).itemsize
    out_itemsize = jnp.dtype(out_dtype).itemsize
    budget, vmem_cap = _vmem_sizes()

    # Flatten features; only ragged (P % 128 != 0) inputs need a last-dim pad.
    x = input_current.reshape(T, P)
    pad_cols = (-P) % LANE
    if pad_cols:
        x = jnp.pad(x, ((0, 0), (0, pad_cols)))
    p_pad = P + pad_cols
    rows = p_pad // LANE
    x = x.reshape(T, rows, LANE)          # free reshape (contiguous)

    t_chunk, tile_rows, n_row_tiles, n_t_chunks = _choose_tiling(
        T, rows, in_itemsize, out_itemsize, budget)

    kernel = _make_lif_kernel(v_init, v_decay, v_threshold, v_reset, t_chunk)

    block = (t_chunk, tile_rows, LANE)
    block_elems = t_chunk * tile_rows * LANE
    vmem_need = (2 * block_elems * in_itemsize
                 + 2 * block_elems * out_itemsize
                 + tile_rows * LANE * 4)
    vmem_limit = int(min(vmem_cap * 3 // 4, max(vmem_need + (8 << 20), 16 << 20)))

    cost = pl.CostEstimate(
        flops=5 * T * P,
        transcendentals=0,
        bytes_accessed=T * P * (in_itemsize + out_itemsize),
    )

    spikes = pl.pallas_call(
        kernel,
        out_shape=jax.ShapeDtypeStruct((T, rows, LANE), out_dtype),
        grid_spec=pltpu.PrefetchScalarGridSpec(
            num_scalar_prefetch=0,
            grid=(n_row_tiles, n_t_chunks),   # time innermost (sequential recurrence)
            in_specs=[pl.BlockSpec(block, lambda r, tc: (tc, r, 0))],
            out_specs=pl.BlockSpec(block, lambda r, tc: (tc, r, 0)),
            scratch_shapes=[pltpu.VMEM((tile_rows, LANE), jnp.float32)],
        ),
        compiler_params=pltpu.CompilerParams(
            dimension_semantics=("parallel", "arbitrary"),
            vmem_limit_bytes=vmem_limit,
        ),
        cost_estimate=cost,
    )(x)

    spikes = spikes.reshape(T, p_pad)
    if pad_cols:
        spikes = spikes[:, :P]
    return spikes.reshape(orig_shape)


def lif_layer_reference(input_current, v_init, v_decay, v_threshold, v_reset):
    """Pure-JAX reference mirroring the PyTorch loop (for correctness check)."""
    x = input_current.astype(jnp.float32)
    T = x.shape[0]
    v = jnp.full_like(x[0], v_init)
    spikes = []
    for t in range(T):
        v = v * v_decay + x[t]
        s = (v - v_threshold >= 0.0).astype(jnp.float32)
        if 0.0 <= v_reset < 10000.0:
            v = v - s * v_threshold
        elif 10000.0 <= v_reset < 20000.0:
            v = v * (1.0 - s) + (v_reset - 10000.0) * s
        spikes.append(s)
    return jnp.stack(spikes, axis=0)


if __name__ == "__main__":
    # LIF hyperparameters (module __init__ args), soft-reset branch.
    V_INIT = 0.0
    V_DECAY = 0.5
    V_THRESHOLD = 1.0
    V_RESET = 0.0
    TIME = 6

    # Deterministic input: (TIME, N, C, H, W) = (6, 2, 4, 16, 16).
    key = jax.random.PRNGKey(0)
    x = jax.random.normal(key, (TIME, 2, 4, 16, 16), dtype=jnp.float32)

    out = lif_layer_forward(
        x,
        v_init=V_INIT,
        v_decay=V_DECAY,
        v_threshold=V_THRESHOLD,
        v_reset=V_RESET,
    )
    out = jax.block_until_ready(out)

    ref = lif_layer_reference(x, V_INIT, V_DECAY, V_THRESHOLD, V_RESET)
    assert out.shape == x.shape and out.dtype == jnp.float32
    assert bool(jnp.all(out == ref)), "soft-reset mismatch vs reference"

    # Hard-reset branch + a feature size that is not a multiple of 128
    # (exercises the ragged-tail path).
    x2 = jax.random.normal(jax.random.PRNGKey(0), (TIME, 2, 3, 5, 7), dtype=jnp.float32)
    out2 = jax.block_until_ready(
        lif_layer_forward(x2, v_init=0.0, v_decay=0.5, v_threshold=1.0, v_reset=10000.0)
    )
    ref2 = lif_layer_reference(x2, 0.0, 0.5, 1.0, 10000.0)
    assert bool(jnp.all(out2 == ref2)), "hard-reset mismatch vs reference"

    print("KERNEL_OK")
</pallas_src>

<mosaic_0001>
module attributes {stable_mosaic.version = 11 : i64} {
  func.func @kernel(%arg0: i32, %arg1: i32, %arg2: memref<6x16x128xf32, #tpu.memory_space<vmem>>, %arg3: memref<6x16x128xf32, #tpu.memory_space<vmem>>, %arg4: memref<16x128xf32, #tpu.memory_space<vmem>>) attributes {dimension_semantics = [#tpu.dimension_semantics<parallel>, #tpu.dimension_semantics<arbitrary>], iteration_bounds = array<i64: 1, 1>, scalar_prefetch = 0 : i64, scratch_operands = 1 : i64, tpu.core_type = #tpu.core_type<tc>, window_params = [{transform_indices = @transform_0, window_bounds = array<i64: 6, 16, 128>}, {transform_indices = @transform_1, window_bounds = array<i64: 6, 16, 128>}]} {
    %c0_i32 = arith.constant 0 : i32
    %0 = arith.cmpi eq, %arg1, %c0_i32 : i32
    %1 = arith.extui %0 : i1 to i32
    %c0_i32_0 = arith.constant 0 : i32
    %2 = arith.cmpi ne, %1, %c0_i32_0 : i32
    scf.if %2 {
      %cst_52 = arith.constant 0.000000e+00 : f32
      %95 = vector.broadcast %cst_52 : f32 to vector<16x128xf32>
      %c0_53 = arith.constant 0 : index
      %c0_54 = arith.constant 0 : index
      %96 = vector.load %arg4[%c0_53, %c0_54] : memref<16x128xf32, #tpu.memory_space<vmem>>, vector<16x128xf32>
      tpu.vector_store %arg4[%c0_53, %c0_54], %95 {strides = array<i32>} : memref<16x128xf32, #tpu.memory_space<vmem>>, vector<16x128xf32>,
    } else {
    }
    %c0 = arith.constant 0 : index
    %c0_1 = arith.constant 0 : index
    %3 = vector.load %arg4[%c0, %c0_1] : memref<16x128xf32, #tpu.memory_space<vmem>>, vector<16x128xf32>
    %cst = arith.constant 5.000000e-01 : f32
    %4 = vector.broadcast %cst : f32 to vector<16x128xf32>
    %5 = arith.mulf %3, %4 : vector<16x128xf32>
    %c0_2 = arith.constant 0 : index
    %c0_3 = arith.constant 0 : index
    %c0_4 = arith.constant 0 : index
    %6 = vector.load %arg2[%c0_2, %c0_3, %c0_4] : memref<6x16x128xf32, #tpu.memory_space<vmem>>, vector<1x16x128xf32>
    %7 = vector.shape_cast %6 : vector<1x16x128xf32> to vector<16x128xf32>
    %8 = arith.addf %5, %7 : vector<16x128xf32>
    %cst_5 = arith.constant 1.000000e+00 : f32
    %9 = vector.broadcast %cst_5 : f32 to vector<16x128xf32>
    %10 = arith.cmpf oge, %8, %9 : vector<16x128xf32>
    %cst_6 = arith.constant 1.000000e+00 : f32
    %11 = vector.broadcast %cst_6 : f32 to vector<16x128xf32>
    %12 = arith.subf %8, %11 : vector<16x128xf32>
    %13 = arith.select %10, %12, %8 : vector<16x128xi1>, vector<16x128xf32>
    %14 = arith.extui %10 : vector<16x128xi1> to vector<16x128xi32>
    %15 = arith.sitofp %14 : vector<16x128xi32> to vector<16x128xf32>
    %c0_7 = arith.constant 0 : index
    %c0_8 = arith.constant 0 : index
    %c0_9 = arith.constant 0 : index
    %16 = vector.load %arg3[%c0_7, %c0_8, %c0_9] : memref<6x16x128xf32, #tpu.memory_space<vmem>>, vector<1x16x128xf32>
    %17 = vector.shape_cast %16 : vector<1x16x128xf32> to vector<16x128xf32>
    %18 = vector.shape_cast %15 : vector<16x128xf32> to vector<1x16x128xf32>
    tpu.vector_store %arg3[%c0_7, %c0_8, %c0_9], %18 {strides = array<i32>} : memref<6x16x128xf32, #tpu.memory_space<vmem>>, vector<1x16x128xf32>,
    %cst_10 = arith.constant 5.000000e-01 : f32
    %19 = vector.broadcast %cst_10 : f32 to vector<16x128xf32>
    %20 = arith.mulf %13, %19 : vector<16x128xf32>
    %c1 = arith.constant 1 : index
    %c0_11 = arith.constant 0 : index
    %c0_12 = arith.constant 0 : index
    %21 = vector.load %arg2[%c1, %c0_11, %c0_12] : memref<6x16x128xf32, #tpu.memory_space<vmem>>, vector<1x16x128xf32>
    %22 = vector.shape_cast %21 : vector<1x16x128xf32> to vector<16x128xf32>
    %23 = arith.addf %20, %22 : vector<16x128xf32>
    %cst_13 = arith.constant 1.000000e+00 : f32
    %24 = vector.broadcast %cst_13 : f32 to vector<16x128xf32>
    %25 = arith.cmpf oge, %23, %24 : vector<16x128xf32>
    %cst_14 = arith.constant 1.000000e+00 : f32
    %26 = vector.broadcast %cst_14 : f32 to vector<16x128xf32>
    %27 = arith.subf %23, %26 : vector<16x128xf32>
    %28 = arith.select %25, %27, %23 : vector<16x128xi1>, vector<16x128xf32>
    %29 = arith.extui %25 : vector<16x128xi1> to vector<16x128xi32>
    %30 = arith.sitofp %29 : vector<16x128xi32> to vector<16x128xf32>
    %c1_15 = arith.constant 1 : index
    %c0_16 = arith.constant 0 : index
    %c0_17 = arith.constant 0 : index
    %31 = vector.load %arg3[%c1_15, %c0_16, %c0_17] : memref<6x16x128xf32, #tpu.memory_space<vmem>>, vector<1x16x128xf32>
    %32 = vector.shape_cast %31 : vector<1x16x128xf32> to vector<16x128xf32>
    %33 = vector.shape_cast %30 : vector<16x128xf32> to vector<1x16x128xf32>
    tpu.vector_store %arg3[%c1_15, %c0_16, %c0_17], %33 {strides = array<i32>} : memref<6x16x128xf32, #tpu.memory_space<vmem>>, vector<1x16x128xf32>,
    %cst_18 = arith.constant 5.000000e-01 : f32
    %34 = vector.broadcast %cst_18 : f32 to vector<16x128xf32>
    %35 = arith.mulf %28, %34 : vector<16x128xf32>
    %c2 = arith.constant 2 : index
    %c0_19 = arith.constant 0 : index
    %c0_20 = arith.constant 0 : index
    %36 = vector.load %arg2[%c2, %c0_19, %c0_20] : memref<6x16x128xf32, #tpu.memory_space<vmem>>, vector<1x16x128xf32>
    %37 = vector.shape_cast %36 : vector<1x16x128xf32> to vector<16x128xf32>
    %38 = arith.addf %35, %37 : vector<16x128xf32>
    %cst_21 = arith.constant 1.000000e+00 : f32
    %39 = vector.broadcast %cst_21 : f32 to vector<16x128xf32>
    %40 = arith.cmpf oge, %38, %39 : vector<16x128xf32>
    %cst_22 = arith.constant 1.000000e+00 : f32
    %41 = vector.broadcast %cst_22 : f32 to vector<16x128xf32>
    %42 = arith.subf %38, %41 : vector<16x128xf32>
    %43 = arith.select %40, %42, %38 : vector<16x128xi1>, vector<16x128xf32>
    %44 = arith.extui %40 : vector<16x128xi1> to vector<16x128xi32>
    %45 = arith.sitofp %44 : vector<16x128xi32> to vector<16x128xf32>
    %c2_23 = arith.constant 2 : index
    %c0_24 = arith.constant 0 : index
    %c0_25 = arith.constant 0 : index
    %46 = vector.load %arg3[%c2_23, %c0_24, %c0_25] : memref<6x16x128xf32, #tpu.memory_space<vmem>>, vector<1x16x128xf32>
    %47 = vector.shape_cast %46 : vector<1x16x128xf32> to vector<16x128xf32>
    %48 = vector.shape_cast %45 : vector<16x128xf32> to vector<1x16x128xf32>
    tpu.vector_store %arg3[%c2_23, %c0_24, %c0_25], %48 {strides = array<i32>} : memref<6x16x128xf32, #tpu.memory_space<vmem>>, vector<1x16x128xf32>,
    %cst_26 = arith.constant 5.000000e-01 : f32
    %49 = vector.broadcast %cst_26 : f32 to vector<16x128xf32>
    %50 = arith.mulf %43, %49 : vector<16x128xf32>
    %c3 = arith.constant 3 : index
    %c0_27 = arith.constant 0 : index
    %c0_28 = arith.constant 0 : index
    %51 = vector.load %arg2[%c3, %c0_27, %c0_28] : memref<6x16x128xf32, #tpu.memory_space<vmem>>, vector<1x16x128xf32>
    %52 = vector.shape_cast %51 : vector<1x16x128xf32> to vector<16x128xf32>
    %53 = arith.addf %50, %52 : vector<16x128xf32>
    %cst_29 = arith.constant 1.000000e+00 : f32
    %54 = vector.broadcast %cst_29 : f32 to vector<16x128xf32>
    %55 = arith.cmpf oge, %53, %54 : vector<16x128xf32>
    %cst_30 = arith.constant 1.000000e+00 : f32
    %56 = vector.broadcast %cst_30 : f32 to vector<16x128xf32>
    %57 = arith.subf %53, %56 : vector<16x128xf32>
    %58 = arith.select %55, %57, %53 : vector<16x128xi1>, vector<16x128xf32>
    %59 = arith.extui %55 : vector<16x128xi1> to vector<16x128xi32>
    %60 = arith.sitofp %59 : vector<16x128xi32> to vector<16x128xf32>
    %c3_31 = arith.constant 3 : index
    %c0_32 = arith.constant 0 : index
    %c0_33 = arith.constant 0 : index
    %61 = vector.load %arg3[%c3_31, %c0_32, %c0_33] : memref<6x16x128xf32, #tpu.memory_space<vmem>>, vector<1x16x128xf32>
    %62 = vector.shape_cast %61 : vector<1x16x128xf32> to vector<16x128xf32>
    %63 = vector.shape_cast %60 : vector<16x128xf32> to vector<1x16x128xf32>
    tpu.vector_store %arg3[%c3_31, %c0_32, %c0_33], %63 {strides = array<i32>} : memref<6x16x128xf32, #tpu.memory_space<vmem>>, vector<1x16x128xf32>,
    %cst_34 = arith.constant 5.000000e-01 : f32
    %64 = vector.broadcast %cst_34 : f32 to vector<16x128xf32>
    %65 = arith.mulf %58, %64 : vector<16x128xf32>
    %c4 = arith.constant 4 : index
    %c0_35 = arith.constant 0 : index
    %c0_36 = arith.constant 0 : index
    %66 = vector.load %arg2[%c4, %c0_35, %c0_36] : memref<6x16x128xf32, #tpu.memory_space<vmem>>, vector<1x16x128xf32>
    %67 = vector.shape_cast %66 : vector<1x16x128xf32> to vector<16x128xf32>
    %68 = arith.addf %65, %67 : vector<16x128xf32>
    %cst_37 = arith.constant 1.000000e+00 : f32
    %69 = vector.broadcast %cst_37 : f32 to vector<16x128xf32>
    %70 = arith.cmpf oge, %68, %69 : vector<16x128xf32>
    %cst_38 = arith.constant 1.000000e+00 : f32
    %71 = vector.broadcast %cst_38 : f32 to vector<16x128xf32>
    %72 = arith.subf %68, %71 : vector<16x128xf32>
    %73 = arith.select %70, %72, %68 : vector<16x128xi1>, vector<16x128xf32>
    %74 = arith.extui %70 : vector<16x128xi1> to vector<16x128xi32>
    %75 = arith.sitofp %74 : vector<16x128xi32> to vector<16x128xf32>
    %c4_39 = arith.constant 4 : index
    %c0_40 = arith.constant 0 : index
    %c0_41 = arith.constant 0 : index
    %76 = vector.load %arg3[%c4_39, %c0_40, %c0_41] : memref<6x16x128xf32, #tpu.memory_space<vmem>>, vector<1x16x128xf32>
    %77 = vector.shape_cast %76 : vector<1x16x128xf32> to vector<16x128xf32>
    %78 = vector.shape_cast %75 : vector<16x128xf32> to vector<1x16x128xf32>
    tpu.vector_store %arg3[%c4_39, %c0_40, %c0_41], %78 {strides = array<i32>} : memref<6x16x128xf32, #tpu.memory_space<vmem>>, vector<1x16x128xf32>,
    %cst_42 = arith.constant 5.000000e-01 : f32
    %79 = vector.broadcast %cst_42 : f32 to vector<16x128xf32>
    %80 = arith.mulf %73, %79 : vector<16x128xf32>
    %c5 = arith.constant 5 : index
    %c0_43 = arith.constant 0 : index
    %c0_44 = arith.constant 0 : index
    %81 = vector.load %arg2[%c5, %c0_43, %c0_44] : memref<6x16x128xf32, #tpu.memory_space<vmem>>, vector<1x16x128xf32>
    %82 = vector.shape_cast %81 : vector<1x16x128xf32> to vector<16x128xf32>
    %83 = arith.addf %80, %82 : vector<16x128xf32>
    %cst_45 = arith.constant 1.000000e+00 : f32
    %84 = vector.broadcast %cst_45 : f32 to vector<16x128xf32>
    %85 = arith.cmpf oge, %83, %84 : vector<16x128xf32>
    %cst_46 = arith.constant 1.000000e+00 : f32
    %86 = vector.broadcast %cst_46 : f32 to vector<16x128xf32>
    %87 = arith.subf %83, %86 : vector<16x128xf32>
    %88 = arith.select %85, %87, %83 : vector<16x128xi1>, vector<16x128xf32>
    %89 = arith.extui %85 : vector<16x128xi1> to vector<16x128xi32>
    %90 = arith.sitofp %89 : vector<16x128xi32> to vector<16x128xf32>
    %c5_47 = arith.constant 5 : index
    %c0_48 = arith.constant 0 : index
    %c0_49 = arith.constant 0 : index
    %91 = vector.load %arg3[%c5_47, %c0_48, %c0_49] : memref<6x16x128xf32, #tpu.memory_space<vmem>>, vector<1x16x128xf32>
    %92 = vector.shape_cast %91 : vector<1x16x128xf32> to vector<16x128xf32>
    %93 = vector.shape_cast %90 : vector<16x128xf32> to vector<1x16x128xf32>
    tpu.vector_store %arg3[%c5_47, %c0_48, %c0_49], %93 {strides = array<i32>} : memref<6x16x128xf32, #tpu.memory_space<vmem>>, vector<1x16x128xf32>,
    %c0_50 = arith.constant 0 : index
    %c0_51 = arith.constant 0 : index
    %94 = vector.load %arg4[%c0_50, %c0_51] : memref<16x128xf32, #tpu.memory_space<vmem>>, vector<16x128xf32>
    tpu.vector_store %arg4[%c0_50, %c0_51], %88 {strides = array<i32>} : memref<16x128xf32, #tpu.memory_space<vmem>>, vector<16x128xf32>,
    return
  }
  func.func @transform_0(%arg0: i32, %arg1: i32) -> (i32, i32, i32) {
    %c0_i32 = arith.constant 0 : i32
    %c0_i32_0 = arith.constant 0 : i32
    return %arg1, %arg0, %c0_i32 : i32, i32, i32
  }
  func.func @transform_1(%arg0: i32, %arg1: i32) -> (i32, i32, i32) {
    %c0_i32 = arith.constant 0 : i32
    %c0_i32_0 = arith.constant 0 : i32
    return %arg1, %arg0, %c0_i32 : i32, i32, i32
  }
}

</mosaic_0001>

<bundles_post_ra>
// kernel: lif_layer_forward.1
= control target key start
LH: loop header
LB: loop body
LE: loop exit
PB: predicated region body
PF: predicated region fallthrough
CT: control target
= control target key end

     0   :  { %v185_v4 = vmov 0.0   ;;  %s280_s0 = inlined_call_operand.vmem [shape: f32[6,16,128], index: 0, kind: input, shape index: {}]   ;;  %s281_s1 = inlined_call_operand.vmem [shape: f32[6,16,128], index: 1, kind: output, shape index: {}]  }
   0x1   :  { %v18_v0 = vld [vmem:[%s280_s0] sm:$0xff]  ;;  %v19_v1 = vld [vmem:[%s280_s0 + $0x8] sm:$0xff]  ;;  %v144_v9 = vld [vmem:[%s280_s0 + $0x10] sm:$0xff] }
   0x2   :  { %vm22_vm0 = vcmp.ge.f32.partialorder %v18_v0, 1.0  ;;  %v140_v2 = vadd.f32 -1.0, %v18_v0  ;;  %vm23_vm1 = vcmp.ge.f32.partialorder %v19_v1, 1.0  ;;  %v141_v3 = vadd.f32 -1.0, %v19_v1  ;;  %v145_v10 = vld [vmem:[%s280_s0 + $0x18] sm:$0xff]  ;;  %v152_v21 = vld [vmem:[%s280_s0 + $0x20] sm:$0xff] }
   0x3   :  { %v142_v5 = vsel %vm22_vm0, 1.0, %v185_v4  ;;  %v143_v6 = vsel %vm23_vm1, 1.0, %v185_v4  ;;  %v153_v22 = vld [vmem:[%s280_s0 + $0x28] sm:$0xff]  ;;  %v160_v33 = vld [vmem:[%s280_s0 + $0x30] sm:$0xff]  ;;  %v161_v34 = vld [vmem:[%s280_s0 + $0x38] sm:$0xff] }
   0x4   :  { %v26_v7 = vsel %vm22_vm0, %v140_v2, %v18_v0  ;;  %32 = vst [vmem:[%s281_s1] sm:$0xff] %v142_v5  ;;  %v27_v8 = vsel %vm23_vm1, %v141_v3, %v19_v1  ;;  %33 = vst [vmem:[%s281_s1 + $0x8] sm:$0xff] %v143_v6  ;;  %v168_v45 = vld [vmem:[%s280_s0 + $0x40] sm:$0xff]  ;;  %v169_v46 = vld [vmem:[%s280_s0 + $0x48] sm:$0xff] }
   0x5   :  { %v34_v11 = vmul.f32 0.5, %v26_v7  ;;  %v35_v12 = vmul.f32 0.5, %v27_v8  ;;  %v176_v57 = vld [vmem:[%s280_s0 + $0x50] sm:$0xff]  ;;  %v177_v58 = vld [vmem:[%s280_s0 + $0x58] sm:$0xff] }
   0x7   :  { %v39_v13 = vadd.f32 %v144_v9, %v34_v11  ;;  %v40_v14 = vadd.f32 %v145_v10, %v35_v12 }
   0x9   :  { %vm41_vm2 = vcmp.ge.f32.partialorder %v39_v13, 1.0  ;;  %v146_v15 = vadd.f32 -1.0, %v39_v13  ;;  %vm42_vm3 = vcmp.ge.f32.partialorder %v40_v14, 1.0  ;;  %v147_v16 = vadd.f32 -1.0, %v40_v14 }
   0xa   :  { %v148_v17 = vsel %vm41_vm2, 1.0, %v185_v4  ;;  %v149_v18 = vsel %vm42_vm3, 1.0, %v185_v4 }
   0xb   :  { %v45_v19 = vsel %vm41_vm2, %v146_v15, %v39_v13  ;;  %150 = vst [vmem:[%s281_s1 + $0x10] sm:$0xff] %v148_v17  ;;  %v46_v20 = vsel %vm42_vm3, %v147_v16, %v40_v14  ;;  %151 = vst [vmem:[%s281_s1 + $0x18] sm:$0xff] %v149_v18 }
   0xc   :  { %v54_v23 = vmul.f32 0.5, %v45_v19  ;;  %v55_v24 = vmul.f32 0.5, %v46_v20 }
   0xe   :  { %v59_v25 = vadd.f32 %v152_v21, %v54_v23  ;;  %v60_v26 = vadd.f32 %v153_v22, %v55_v24 }
  0x10   :  { %vm61_vm4 = vcmp.ge.f32.partialorder %v59_v25, 1.0  ;;  %v154_v27 = vadd.f32 -1.0, %v59_v25  ;;  %vm62_vm5 = vcmp.ge.f32.partialorder %v60_v26, 1.0  ;;  %v155_v28 = vadd.f32 -1.0, %v60_v26 }
  0x11   :  { %v156_v29 = vsel %vm61_vm4, 1.0, %v185_v4  ;;  %v157_v30 = vsel %vm62_vm5, 1.0, %v185_v4 }
  0x12   :  { %v65_v31 = vsel %vm61_vm4, %v154_v27, %v59_v25  ;;  %158 = vst [vmem:[%s281_s1 + $0x20] sm:$0xff] %v156_v29  ;;  %v66_v32 = vsel %vm62_vm5, %v155_v28, %v60_v26  ;;  %159 = vst [vmem:[%s281_s1 + $0x28] sm:$0xff] %v157_v30 }
  0x13   :  { %v74_v35 = vmul.f32 0.5, %v65_v31  ;;  %v75_v36 = vmul.f32 0.5, %v66_v32 }
  0x15   :  { %v79_v37 = vadd.f32 %v160_v33, %v74_v35  ;;  %v80_v38 = vadd.f32 %v161_v34, %v75_v36 }
  0x17   :  { %vm81_vm6 = vcmp.ge.f32.partialorder %v79_v37, 1.0  ;;  %v162_v39 = vadd.f32 -1.0, %v79_v37  ;;  %vm82_vm7 = vcmp.ge.f32.partialorder %v80_v38, 1.0  ;;  %v163_v40 = vadd.f32 -1.0, %v80_v38 }
  0x18   :  { %v164_v41 = vsel %vm81_vm6, 1.0, %v185_v4  ;;  %v165_v42 = vsel %vm82_vm7, 1.0, %v185_v4 }
  0x19   :  { %v85_v43 = vsel %vm81_vm6, %v162_v39, %v79_v37  ;;  %166 = vst [vmem:[%s281_s1 + $0x30] sm:$0xff] %v164_v41  ;;  %v86_v44 = vsel %vm82_vm7, %v163_v40, %v80_v38  ;;  %167 = vst [vmem:[%s281_s1 + $0x38] sm:$0xff] %v165_v42 }
  0x1a   :  { %v94_v47 = vmul.f32 0.5, %v85_v43  ;;  %v95_v48 = vmul.f32 0.5, %v86_v44 }
  0x1c   :  { %v99_v49 = vadd.f32 %v168_v45, %v94_v47  ;;  %v100_v50 = vadd.f32 %v169_v46, %v95_v48 }
  0x1e   :  { %vm101_vm8 = vcmp.ge.f32.partialorder %v99_v49, 1.0  ;;  %v170_v51 = vadd.f32 -1.0, %v99_v49  ;;  %vm102_vm9 = vcmp.ge.f32.partialorder %v100_v50, 1.0  ;;  %v171_v52 = vadd.f32 -1.0, %v100_v50 }
  0x1f   :  { %v172_v53 = vsel %vm101_vm8, 1.0, %v185_v4  ;;  %v173_v54 = vsel %vm102_vm9, 1.0, %v185_v4 }
  0x20   :  { %v105_v55 = vsel %vm101_vm8, %v170_v51, %v99_v49  ;;  %174 = vst [vmem:[%s281_s1 + $0x40] sm:$0xff] %v172_v53  ;;  %v106_v56 = vsel %vm102_vm9, %v171_v52, %v100_v50  ;;  %175 = vst [vmem:[%s281_s1 + $0x48] sm:$0xff] %v173_v54 }
  0x21   :  { %v114_v59 = vmul.f32 0.5, %v105_v55  ;;  %v115_v60 = vmul.f32 0.5, %v106_v56 }
  0x23   :  { %v119_v61 = vadd.f32 %v176_v57, %v114_v59  ;;  %v120_v62 = vadd.f32 %v177_v58, %v115_v60 }
  0x25   :  { %vm121_vm10 = vcmp.ge.f32.partialorder %v119_v61, 1.0  ;;  %vm122_vm11 = vcmp.ge.f32.partialorder %v120_v62, 1.0 }
  0x26   :  { %v180_v63 = vsel %vm121_vm10, 1.0, %v185_v4  ;;  %v181_v0 = vsel %vm122_vm11, 1.0, %v185_v4 }
  0x27   :  { %182 = vst [vmem:[%s281_s1 + $0x50] sm:$0xff] %v180_v63  ;;  %183 = vst [vmem:[%s281_s1 + $0x58] sm:$0xff] %v181_v0 }

</bundles_post_ra>
